<compile_context>
chip_gen: v7x
topology: tpu7x:2x2x1
jax: 0.10.0
libtpu: 0.0.40
codegen_flags: <defaults>
</compile_context>

<pallas_src>
import jax
import jax.numpy as jnp
from jax.experimental import pallas as pl
from jax.experimental.pallas import tpu as pltpu


def _round_up(n, m):
    return ((n + m - 1) // m) * m


def _nest_mlp_kernel(x_ref, w_ref, b_ref, o_ref):
    # x_ref: (TB, 40), w_ref: (40, 30) resident, b_ref: (1, 30) resident.
    x = x_ref[...]
    w = w_ref[...]
    b = b_ref[...]
    y = jnp.dot(x, w, preferred_element_type=jnp.float32) + b
    o_ref[...] = jnp.maximum(y, 0.0).astype(o_ref.dtype)


def nest_mlp(x, w_t, b, *, tile_b=8192):
    """x: (B, 40) f32, w_t: (40, 30) f32, b: (30,) f32 -> (B, 30) f32.

    tile_b: batch tile (multiple of 8). 8192 is a good default everywhere;
    use 16384 on v7x, 4096 on v5e if you prefer not to raise the VMEM limit.
    """
    B, In = x.shape
    Out = w_t.shape[1]
    b2 = b.reshape(1, Out).astype(jnp.float32)

    # Batch tile: multiple of 8 (f32 sublane), capped at tile_b and at the
    # (rounded-up) batch size so small batches use a single small tile.
    tb = min(_round_up(tile_b, 8), _round_up(B, 8))
    # Give multi-TC parts (v7x) at least 2 batch tiles when there is enough
    # work for splitting to matter; neutral on single-TC v5e/v6e.
    if B > 2048 and pl.cdiv(B, tb) < 2:
        tb = _round_up(pl.cdiv(B, 2), 8)
    grid = (pl.cdiv(B, tb),)

    # Ragged last block: Pallas masks the out-of-bounds rows on writeback;
    # the kernel has no cross-row reduction, so garbage edge rows are benign.

    cost = pl.CostEstimate(
        flops=2 * B * In * Out,
        transcendentals=0,
        bytes_accessed=4 * (B * In + In * Out + Out + B * Out),
    )

    # Double-buffered, lane-padded x (TB,40->128) and out (TB,30->128) blocks
    # cost ~TB*2 KiB of VMEM; raise the scoped limit so big tiles compile on
    # v5e (16 MiB default) and tile_b=16384 compiles on v6e/v7x (32 MiB).
    pipeline_bytes = 2 * 2 * tb * 512  # 2 buffers x (x block + out block)
    vmem_limit = max(32 * 1024 * 1024, pipeline_bytes + (4 << 20))

    out = pl.pallas_call(
        _nest_mlp_kernel,
        out_shape=jax.ShapeDtypeStruct((B, Out), jnp.float32),
        grid=grid,
        in_specs=[
            pl.BlockSpec((tb, In), lambda i: (i, 0)),      # batch-tiled input
            pl.BlockSpec((In, Out), lambda i: (0, 0)),     # weight, VMEM-resident
            pl.BlockSpec((1, Out), lambda i: (0, 0)),      # bias, VMEM-resident
        ],
        out_specs=pl.BlockSpec((tb, Out), lambda i: (i, 0)),
        compiler_params=pltpu.CompilerParams(
            dimension_semantics=("parallel",),
            vmem_limit_bytes=vmem_limit,
        ),
        cost_estimate=cost,
    )(x, w_t, b2)

    return out


if __name__ == "__main__":
    key = jax.random.PRNGKey(0)
    k_x, k_w, k_b, k_x2 = jax.random.split(key, 4)

    In, Out = 40, 30

    # Deterministic parameter init mimicking PyTorch nn.Linear default:
    # uniform(-1/sqrt(in_features), 1/sqrt(in_features)).
    bound = 1.0 / jnp.sqrt(jnp.float32(In))
    w = jax.random.uniform(k_w, (Out, In), jnp.float32, -bound, bound)  # torch layout
    b = jax.random.uniform(k_b, (Out,), jnp.float32, -bound, bound)
    w_t = w.T  # (In, Out) for the kernel

    # Small-shape check (single tile).
    B = 8
    x = jax.random.normal(k_x, (B, In), jnp.float32)
    y = jax.block_until_ready(nest_mlp(x, w_t, b))
    y_ref = jnp.maximum(x @ w_t + b[None, :], 0.0)
    assert y.shape == (B, Out)
    assert jnp.allclose(y, y_ref, atol=1e-5, rtol=1e-5)

    # Ragged-grid path check (B not divisible by tile; no wrapper pad/slice).
    B2 = 200
    x2 = jax.random.normal(k_x2, (B2, In), jnp.float32)
    y2 = jax.block_until_ready(nest_mlp(x2, w_t, b, tile_b=64))
    y2_ref = jnp.maximum(x2 @ w_t + b[None, :], 0.0)
    assert y2.shape == (B2, Out)
    assert jnp.allclose(y2, y2_ref, atol=1e-5, rtol=1e-5)

    print("KERNEL_OK")
</pallas_src>

<mosaic_0001>
module attributes {stable_mosaic.version = 11 : i64} {
  func.func @_nest_mlp_kernel(%arg0: i32, %arg1: memref<8x40xf32, #tpu.memory_space<vmem>>, %arg2: memref<40x30xf32, #tpu.memory_space<vmem>>, %arg3: memref<1x30xf32, #tpu.memory_space<vmem>>, %arg4: memref<8x30xf32, #tpu.memory_space<vmem>>) attributes {dimension_semantics = [#tpu.dimension_semantics<parallel>], iteration_bounds = array<i64: 1>, scalar_prefetch = 0 : i64, scratch_operands = 0 : i64, tpu.core_type = #tpu.core_type<tc>, window_params = [{transform_indices = @transform_0, window_bounds = array<i64: 8, 40>}, {pipeline_mode = #tpu.pipeline_mode<synchronous>, transform_indices = @transform_1, window_bounds = array<i64: 40, 30>}, {pipeline_mode = #tpu.pipeline_mode<synchronous>, transform_indices = @transform_2, window_bounds = array<i64: 1, 30>}, {transform_indices = @transform_3, window_bounds = array<i64: 8, 30>}]} {
    %c0 = arith.constant 0 : index
    %c0_0 = arith.constant 0 : index
    %0 = vector.load %arg1[%c0, %c0_0] : memref<8x40xf32, #tpu.memory_space<vmem>>, vector<8x40xf32>
    %c0_1 = arith.constant 0 : index
    %c0_2 = arith.constant 0 : index
    %1 = vector.load %arg2[%c0_1, %c0_2] : memref<40x30xf32, #tpu.memory_space<vmem>>, vector<40x30xf32>
    %c0_3 = arith.constant 0 : index
    %c0_4 = arith.constant 0 : index
    %2 = vector.load %arg3[%c0_3, %c0_4] : memref<1x30xf32, #tpu.memory_space<vmem>>, vector<1x30xf32>
    %cst = arith.constant dense<0.000000e+00> : vector<8x30xf32>
    %3 = tpu.matmul %0, %1, %cst {dimension_numbers = #tpu.dot_dimension_numbers<[1], [0], [0], [1], [0, 0, 1, 1], [], []>} : vector<8x40xf32>, vector<40x30xf32>, vector<8x30xf32> -> vector<8x30xf32>
    %4 = vector.broadcast %2 : vector<1x30xf32> to vector<8x30xf32>
    %5 = arith.addf %3, %4 : vector<8x30xf32>
    %cst_5 = arith.constant 0.000000e+00 : f32
    %6 = vector.broadcast %cst_5 : f32 to vector<8x30xf32>
    %7 = arith.maximumf %5, %6 : vector<8x30xf32>
    %c0_6 = arith.constant 0 : index
    %c0_7 = arith.constant 0 : index
    %8 = vector.load %arg4[%c0_6, %c0_7] : memref<8x30xf32, #tpu.memory_space<vmem>>, vector<8x30xf32>
    tpu.vector_store %arg4[%c0_6, %c0_7], %7 {strides = array<i32>} : memref<8x30xf32, #tpu.memory_space<vmem>>, vector<8x30xf32>,
    return
  }
  func.func @transform_0(%arg0: i32) -> (i32, i32) {
    %c0_i32 = arith.constant 0 : i32
    %c0_i32_0 = arith.constant 0 : i32
    return %arg0, %c0_i32 : i32, i32
  }
  func.func @transform_1(%arg0: i32) -> (i32, i32) {
    %c0_i32 = arith.constant 0 : i32
    %c0_i32_0 = arith.constant 0 : i32
    %c0_i32_1 = arith.constant 0 : i32
    return %c0_i32, %c0_i32_0 : i32, i32
  }
  func.func @transform_2(%arg0: i32) -> (i32, i32) {
    %c0_i32 = arith.constant 0 : i32
    %c0_i32_0 = arith.constant 0 : i32
    %c0_i32_1 = arith.constant 0 : i32
    return %c0_i32, %c0_i32_0 : i32, i32
  }
  func.func @transform_3(%arg0: i32) -> (i32, i32) {
    %c0_i32 = arith.constant 0 : i32
    %c0_i32_0 = arith.constant 0 : i32
    return %arg0, %c0_i32 : i32, i32
  }
}

</mosaic_0001>

<bundles_post_ra>
// kernel: tpu_custom_call.1
= control target key start
LH: loop header
LB: loop body
LE: loop exit
PB: predicated region body
PF: predicated region fallthrough
CT: control target
= control target key end

     0   :  { %v174_v3 = vmov 0.0|0.0   ;;  %vm175_vm0 = vmmov 0   ;;  %v176_v6 = vmov 0.0   ;;  %s231_s0 = inlined_call_operand.vmem [shape: f32[8,40], index: 0, kind: input, shape index: {}]   ;;  %s232_s1 = inlined_call_operand.vmem [shape: f32[40,30], index: 1, kind: input, shape index: {}]   ;;  %s233_s2 = inlined_call_operand.vmem [shape: f32[1,30], index: 2, kind: input, shape index: {}]   ;;  %s234_s3 = inlined_call_operand.hbm [shape: f32[8,30], index: 3, kind: output, shape index: {}]  }
   0x1   :  { %v16_v0 = vld [vmem:[%s232_s1] sm:$0xff]  ;;  %v17_v1 = vld [vmem:[%s232_s1 + $0x8] sm:$0xff]  ;;  %v18_v2 = vld [vmem:[%s232_s1 + $0x10] sm:$0xff]  ;;  %140 = vmatprep.subr.bf16.mxu0 %v174_v3  ;;  %137 = vmatprep.mubr.msk.f32.mxu0 %vm175_vm0, %v176_v6 }
   0x2   :  { %v141_v4 = vpack.c.bf16 %v17_v1, %v16_v0  ;;  %v19_v5 = vld [vmem:[%s232_s1 + $0x18] sm:$0xff] }
   0x3   :  { %8 = vsyncpa [#allocation3], 0  ;;  %v144_v7 = vpack.c.bf16 %v19_v5, %v18_v2  ;;  %v20_v8 = vld [vmem:[%s232_s1 + $0x20] sm:$0xff]  ;;  %vm28_vm1 = vcmask 326656   ;;  %s177_s26 = smov [#allocation2]   ;;  %vm103_vm2 = vcmask 244736  }
   0x4   :  { %142 = vmatpush3.bf16.msra.mxu0 %v141_v4  ;;  %v15_v9 = vld [vmem:[%s231_s0] sm:$0xff]  ;;  %s111_s27 = sshll.u32 %s177_s26, 4  ;;  %s112_s27 = int_to_ptr.vmem [resolvable:$true] %s111_s27 }
   0x5   :  { %143 = vmatprep.subr.bf16.mxu0 %v174_v3  ;;  %v119_v10 = vld [vmem:[%s233_s2] ss:$0 sm:$0xff]  ;;  %s150_s1 = scalar_lea.vmem %s112_s27, 128  ;;  %p155_p1 = scmp.lt.s32.totalorder %s112_s27, %s112_s27 }
   0x6   :  { %p151_p0 = scmp.ne.s32.totalorder %s112_s27, %s150_s1  ;;  %p156_p2 = scmp.lt.s32.totalorder %s150_s1, %s150_s1 }
   0x8   :  { %145 = vmatpush3.bf16.msra.mxu0 %v144_v7  ;;  %p157_p3 = por %p156_p2, %p155_p1 }
   0x9   :  { %135 = vmatprep.subr.mxu0 %v176_v6 }
   0xa   :  { %p158_p4 = pnand %p157_p3, %p151_p0 }
   0xc   :  { %136 = vmatpush3.msra.mxu0 %v20_v8 }
   0xd   :  { %138 = vmatmul.mubr.msk.f32.vlgmr.msra.gmra.mrb[0].mxu0 %vm28_vm1, %v15_v9 }
  0xe0   :  { %v98_v11 = vpop.f32.mrb[0].mxu0 }
  0xe1   :  { %v99_v12 = vadd.f32 %v119_v10, %v98_v11  ;;  %v139_v13 = vpop.f32.mrb[1].mxu0 }
  0xe3   :  { %v102_v14 = vmax.f32 %v99_v12, 0.0 }
  0xe5   :  { %104 = vst.msk [vmem:[#allocation2] sm:$0xff] %vm103_vm2, %v102_v14 }
  0xe6   :  { %161 = shalt.err (!%p158_p4)
}
  0xe7   :  { %s162_s2 = scalar_lea.hbm %s234_s3, 128 }
  0xe8   :  { %p163_p5 = scmp.ne.s32.totalorder %s234_s3, %s162_s2  ;;  %p166_p6 = scmp.lt.u32.totalorder %s162_s2, %s234_s3 }
  0xea   :  { %p168_p7 = pnand %p166_p6, %p163_p5 }
  0xec   :  { %171 = shalt.err (!%p168_p7)
}
  0xed   :  { %114 = dma.vmem_to_hbm [thread:$0]  %s112_s27, 128, %s234_s3, [#allocation3]  }
  0xee   :  { %172 = dma.done.wait [#allocation3], 128  }
  0xef   :  { %173 = vsyncadd [#allocation3], 4294967168 }
  0xf0   :  { %118 = vsyncpa [#allocation3], 1 }

</bundles_post_ra>
